<compile_context>
chip_gen: v7x
topology: tpu7x:2x2x1
jax: 0.10.0
libtpu: 0.0.40
codegen_flags: <defaults>
</compile_context>

<pallas_src>
import jax
import jax.numpy as jnp
from jax.experimental import pallas as pl
from jax.experimental.pallas import tpu as pltpu


# ----------------------------- glue (plain JAX) -----------------------------

def calculate_laplacian_with_self_loop(adj):
    """D^{-1/2} (A + I) D^{-1/2}, matching T-GCN's helper (init-time buffer)."""
    a = adj + jnp.eye(adj.shape[0], dtype=adj.dtype)
    row_sum = a.sum(axis=1)
    d_inv_sqrt = jnp.power(row_sum, -0.5)
    d_inv_sqrt = jnp.where(jnp.isinf(d_inv_sqrt), 0.0, d_inv_sqrt)
    d_mat = jnp.diag(d_inv_sqrt)
    return (a @ d_mat).T @ d_mat


def xavier_uniform(key, shape, dtype=jnp.float32):
    fan_in, fan_out = shape[0], shape[1]
    limit = jnp.sqrt(6.0 / (fan_in + fan_out))
    return jax.random.uniform(key, shape, dtype=dtype, minval=-limit, maxval=limit)


def _round_up(x, m):
    return (x + m - 1) // m * m


# ------------------------------- Pallas kernel ------------------------------

def _tgcn_gconv_kernel(feat_ref, w_ref, bias_ref, lap_ref, out_ref):
    """One (laplacian-row-tile, batch) grid step of the fused TGCN graph convolution.

    feat_ref: (B, N, H+1)        VMEM-resident features [inputs | hidden], operand dtype
    w_ref:    (H+1, O_pad)       VMEM-resident weights (zero-padded columns), operand dtype
    bias_ref: (1, O_pad)         VMEM-resident bias (zero-padded), f32
    lap_ref:  (tile_N, N)        laplacian row tile for this step, operand dtype
    out_ref:  (1, tile_N, O_pad) output block for (batch, row tile), f32
    """
    b = pl.program_id(1)

    # 1) Feature transform first (output_dim < num_gru_units + 1):
    #    (N, H+1) @ (H+1, O_pad), f32 accumulation on the MXU.
    t = jnp.dot(feat_ref[b], w_ref[...], preferred_element_type=jnp.float32)

    # 2) Graph aggregation over this laplacian row tile:
    #    (tile_N, N) @ (N, O_pad), f32 accumulation; f32 bias add; lane-dense store.
    agg = jnp.dot(lap_ref[...], t.astype(lap_ref.dtype),
                  preferred_element_type=jnp.float32)
    out_ref[0] = (agg + bias_ref[...]).astype(out_ref.dtype)


def tgcn_graph_convolution(inputs, hidden_state, laplacian, weights, biases,
                           num_gru_units, output_dim, *, precise=False):
    """Pallas implementation of TGCNGraphConvolution.forward.

    inputs:       (B, N)
    hidden_state: (B, N * num_gru_units)
    returns:      (B, N * output_dim)

    precise=False: bf16 MXU operands, f32 accumulation (fast path).
    precise=True:  f32 operands end-to-end (tight parity with the f32 PyTorch module).
    """
    B, N = inputs.shape
    H, O = num_gru_units, output_dim
    H1 = H + 1
    op_dtype = jnp.float32 if precise else jnp.bfloat16
    op_bytes = jnp.dtype(op_dtype).itemsize

    # Features: concat the inputs channel in front of the hidden channels (same channel order
    # as the PyTorch cat); batch stays a leading dim -> no transposes anywhere.
    feat = jnp.concatenate(
        [inputs.reshape(B, N, 1), hidden_state.reshape(B, N, H)],
        axis=2).astype(op_dtype)                                        # (B, N, H+1)

    # Lane-dense output channels: zero-pad O up to a multiple of 128.
    o_pad = _round_up(O, 128)
    w_p = jnp.zeros((H1, o_pad), jnp.float32).at[:, :O].set(
        weights.astype(jnp.float32)).astype(op_dtype)                   # (H+1, O_pad)
    b_p = jnp.zeros((1, o_pad), jnp.float32).at[0, :O].set(
        biases.astype(jnp.float32))                                     # (1, O_pad)

    # Laplacian row-tile: largest multiple-of-8 tile (<= 256) whose double-buffered lap/out
    # stream fits the per-generation VMEM budget; prefer >= 2 tiles so the DMA pipeline has
    # something to overlap with compute.
    try:
        vmem_cap = int(pltpu.get_tpu_info().vmem_capacity_bytes)
    except Exception:  # interpret mode / older runtimes
        vmem_cap = 64 * 1024 * 1024
    vmem_budget = (3 * vmem_cap) // 4

    resident_bytes = (feat.size * op_bytes + H1 * o_pad * op_bytes      # feat, weights
                      + o_pad * 4 + N * o_pad * 4)                      # bias, t intermediate
    stream_row_bytes = N * op_bytes + o_pad * 4                         # lap row + out row
    avail = max(vmem_budget - resident_bytes, 32 * stream_row_bytes)
    tile_rows = max(8, min(256, (avail // (2 * stream_row_bytes)) // 8 * 8))
    n8 = _round_up(N, 8)
    if n8 > 8:
        tile_rows = min(tile_rows, max(8, _round_up(n8 // 2, 8)))
    n_pad = _round_up(N, tile_rows)
    grid_rows = n_pad // tile_rows

    lap = laplacian.astype(op_dtype)
    if n_pad > N:
        lap = jnp.zeros((n_pad, N), op_dtype).at[:N, :].set(lap)        # zero row padding

    steps = grid_rows * B
    flops = steps * 2 * N * o_pad * (H1 + tile_rows)
    bytes_accessed = (feat.size * op_bytes + w_p.size * op_bytes + b_p.size * 4
                      + lap.size * op_bytes + B * n_pad * o_pad * 4)

    out = pl.pallas_call(
        _tgcn_gconv_kernel,
        out_shape=jax.ShapeDtypeStruct((B, n_pad, o_pad), jnp.float32),
        grid_spec=pltpu.PrefetchScalarGridSpec(
            num_scalar_prefetch=0,
            grid=(grid_rows, B),
            in_specs=[
                # Resident blocks (constant index_map -> DMA'd once, reused every step).
                pl.BlockSpec((B, N, H1), lambda i, b: (0, 0, 0)),       # features
                pl.BlockSpec((H1, o_pad), lambda i, b: (0, 0)),         # weights
                pl.BlockSpec((1, o_pad), lambda i, b: (0, 0)),          # bias
                # Streamed laplacian row tile (changes with i only).
                pl.BlockSpec((tile_rows, N), lambda i, b: (i, 0)),
            ],
            out_specs=pl.BlockSpec((1, tile_rows, o_pad), lambda i, b: (b, i, 0)),
        ),
        compiler_params=pltpu.CompilerParams(
            dimension_semantics=("parallel", "arbitrary"),
            vmem_limit_bytes=int(min(vmem_budget, 128 * 1024 * 1024)),
        ),
        cost_estimate=pl.CostEstimate(
            flops=flops, transcendentals=0, bytes_accessed=bytes_accessed),
    )(feat, w_p, b_p, lap)

    # Drop row/channel padding; return the PyTorch layout (B, N * output_dim).
    return out[:, :N, :O].reshape(B, N * O)


# ------------------------------ pure-JAX references --------------------------

def tgcn_graph_convolution_ref(inputs, hidden_state, laplacian, weights, biases,
                               num_gru_units, output_dim):
    """f32 reference matching the PyTorch module exactly (aggregate, then transform)."""
    B, N = inputs.shape
    hidden = hidden_state.reshape(B, N, num_gru_units)
    concat = jnp.concatenate([inputs[:, :, None], hidden], axis=2)      # (B, N, H+1)
    ax = jnp.einsum('nm,bmf->bnf', laplacian, concat,
                    precision=jax.lax.Precision.HIGHEST)
    out = jnp.einsum('bnf,fo->bno', ax, weights,
                     precision=jax.lax.Precision.HIGHEST) + biases
    return out.reshape(B, N * output_dim)


def tgcn_graph_convolution_bf16_ref(inputs, hidden_state, laplacian, weights, biases,
                                    num_gru_units, output_dim):
    """Reference mirroring the kernel's default bf16-operand / f32-accumulate math."""
    B, N = inputs.shape
    H, O = num_gru_units, output_dim
    feat = jnp.concatenate([inputs[:, :, None], hidden_state.reshape(B, N, H)],
                           axis=2).astype(jnp.bfloat16)
    t = jnp.einsum('bnf,fo->bno', feat, weights.astype(jnp.bfloat16),
                   preferred_element_type=jnp.float32).astype(jnp.bfloat16)
    agg = jnp.einsum('nm,bmo->bno', laplacian.astype(jnp.bfloat16), t,
                     preferred_element_type=jnp.float32)
    return (agg + biases).reshape(B, N * O)


# ------------------------------------ main -----------------------------------

if __name__ == "__main__":
    B = 2              # batch_size
    N = 16             # num_nodes
    H = 32             # num_gru_units
    O = 8              # output_dim
    bias_init = 0.0

    key = jax.random.PRNGKey(0)
    k_adj, k_w, k_x, k_h = jax.random.split(key, 4)

    # Deterministic symmetric non-negative adjacency.
    a = jax.random.uniform(k_adj, (N, N), dtype=jnp.float32)
    adj = (a + a.T) * 0.5
    laplacian = calculate_laplacian_with_self_loop(adj)

    # Parameters (module __init__ shapes): weights (H+1, O), biases (O,)
    weights = xavier_uniform(k_w, (H + 1, O))
    biases = jnp.full((O,), bias_init, dtype=jnp.float32)

    # Forward inputs: inputs (B, N), hidden_state (B, N*H)
    inputs = jax.random.normal(k_x, (B, N), dtype=jnp.float32)
    hidden_state = jax.random.normal(k_h, (B, N * H), dtype=jnp.float32)

    out = tgcn_graph_convolution(inputs, hidden_state, laplacian, weights, biases,
                                 num_gru_units=H, output_dim=O)
    out = jax.block_until_ready(out)
    assert out.shape == (B, N * O), out.shape

    ref_bf16 = tgcn_graph_convolution_bf16_ref(inputs, hidden_state, laplacian, weights,
                                               biases, num_gru_units=H, output_dim=O)
    ref_f32 = tgcn_graph_convolution_ref(inputs, hidden_state, laplacian, weights,
                                         biases, num_gru_units=H, output_dim=O)

    # Tight check against a reference using the same bf16-operand / f32-accumulate math.
    assert jnp.allclose(out, ref_bf16, atol=1e-3, rtol=1e-3), "mismatch vs bf16-matched reference"
    # Loose sanity check against the full-f32 PyTorch-equivalent reference.
    assert jnp.allclose(out, ref_f32, atol=1e-1, rtol=1e-1), "mismatch vs f32 reference"

    # Precise (all-f32 operand) path for closer parity with the PyTorch module.
    out_precise = tgcn_graph_convolution(inputs, hidden_state, laplacian, weights, biases,
                                         num_gru_units=H, output_dim=O, precise=True)
    out_precise = jax.block_until_ready(out_precise)
    assert jnp.allclose(out_precise, ref_f32, atol=5e-2, rtol=5e-2), "mismatch (precise) vs f32 ref"

    print("KERNEL_OK")
</pallas_src>

<mosaic_0001>
module attributes {stable_mosaic.version = 11 : i64} {
  func.func @_tgcn_gconv_kernel(%arg0: i32, %arg1: i32, %arg2: memref<2x16x33xbf16, #tpu.memory_space<vmem>>, %arg3: memref<33x128xbf16, #tpu.memory_space<vmem>>, %arg4: memref<1x128xf32, #tpu.memory_space<vmem>>, %arg5: memref<8x16xbf16, #tpu.memory_space<vmem>>, %arg6: memref<1x8x128xf32, #tpu.memory_space<vmem>>) attributes {dimension_semantics = [#tpu.dimension_semantics<parallel>, #tpu.dimension_semantics<arbitrary>], iteration_bounds = array<i64: 2, 2>, scalar_prefetch = 0 : i64, scratch_operands = 0 : i64, tpu.core_type = #tpu.core_type<tc>, window_params = [{pipeline_mode = #tpu.pipeline_mode<synchronous>, transform_indices = @transform_0, window_bounds = array<i64: 2, 16, 33>}, {pipeline_mode = #tpu.pipeline_mode<synchronous>, transform_indices = @transform_1, window_bounds = array<i64: 33, 128>}, {pipeline_mode = #tpu.pipeline_mode<synchronous>, transform_indices = @transform_2, window_bounds = array<i64: 1, 128>}, {transform_indices = @transform_3, window_bounds = array<i64: 8, 16>}, {transform_indices = @transform_4, window_bounds = array<i64: 1, 8, 128>}]} {
    %0 = arith.index_cast %arg1 : i32 to index
    %c0 = arith.constant 0 : index
    %c0_0 = arith.constant 0 : index
    %1 = vector.load %arg2[%0, %c0, %c0_0] : memref<2x16x33xbf16, #tpu.memory_space<vmem>>, vector<1x16x33xbf16>
    %2 = vector.shape_cast %1 : vector<1x16x33xbf16> to vector<16x33xbf16>
    %c0_1 = arith.constant 0 : index
    %c0_2 = arith.constant 0 : index
    %3 = vector.load %arg3[%c0_1, %c0_2] : memref<33x128xbf16, #tpu.memory_space<vmem>>, vector<33x128xbf16>
    %cst = arith.constant dense<0.000000e+00> : vector<16x128xf32>
    %4 = tpu.matmul %2, %3, %cst {dimension_numbers = #tpu.dot_dimension_numbers<[1], [0], [0], [1], [0, 0, 1, 1], [], []>} : vector<16x33xbf16>, vector<33x128xbf16>, vector<16x128xf32> -> vector<16x128xf32>
    %c0_3 = arith.constant 0 : index
    %c0_4 = arith.constant 0 : index
    %5 = vector.load %arg5[%c0_3, %c0_4] : memref<8x16xbf16, #tpu.memory_space<vmem>>, vector<8x16xbf16>
    %6 = arith.truncf %4 : vector<16x128xf32> to vector<16x128xbf16>
    %cst_5 = arith.constant dense<0.000000e+00> : vector<8x128xf32>
    %7 = tpu.matmul %5, %6, %cst_5 {dimension_numbers = #tpu.dot_dimension_numbers<[1], [0], [0], [1], [0, 0, 1, 1], [], []>} : vector<8x16xbf16>, vector<16x128xbf16>, vector<8x128xf32> -> vector<8x128xf32>
    %c0_6 = arith.constant 0 : index
    %c0_7 = arith.constant 0 : index
    %8 = vector.load %arg4[%c0_6, %c0_7] : memref<1x128xf32, #tpu.memory_space<vmem>>, vector<1x128xf32>
    %9 = vector.broadcast %8 : vector<1x128xf32> to vector<8x128xf32>
    %10 = arith.addf %7, %9 : vector<8x128xf32>
    %c0_8 = arith.constant 0 : index
    %c0_9 = arith.constant 0 : index
    %c0_10 = arith.constant 0 : index
    %11 = vector.load %arg6[%c0_8, %c0_9, %c0_10] : memref<1x8x128xf32, #tpu.memory_space<vmem>>, vector<1x8x128xf32>
    %12 = vector.shape_cast %11 : vector<1x8x128xf32> to vector<8x128xf32>
    %13 = vector.shape_cast %10 : vector<8x128xf32> to vector<1x8x128xf32>
    tpu.vector_store %arg6[%c0_8, %c0_9, %c0_10], %13 {strides = array<i32>} : memref<1x8x128xf32, #tpu.memory_space<vmem>>, vector<1x8x128xf32>,
    return
  }
  func.func @transform_0(%arg0: i32, %arg1: i32) -> (i32, i32, i32) {
    %c0_i32 = arith.constant 0 : i32
    %c0_i32_0 = arith.constant 0 : i32
    %c0_i32_1 = arith.constant 0 : i32
    %c0_i32_2 = arith.constant 0 : i32
    return %c0_i32, %c0_i32_0, %c0_i32_1 : i32, i32, i32
  }
  func.func @transform_1(%arg0: i32, %arg1: i32) -> (i32, i32) {
    %c0_i32 = arith.constant 0 : i32
    %c0_i32_0 = arith.constant 0 : i32
    %c0_i32_1 = arith.constant 0 : i32
    return %c0_i32, %c0_i32_0 : i32, i32
  }
  func.func @transform_2(%arg0: i32, %arg1: i32) -> (i32, i32) {
    %c0_i32 = arith.constant 0 : i32
    %c0_i32_0 = arith.constant 0 : i32
    %c0_i32_1 = arith.constant 0 : i32
    return %c0_i32, %c0_i32_0 : i32, i32
  }
  func.func @transform_3(%arg0: i32, %arg1: i32) -> (i32, i32) {
    %c0_i32 = arith.constant 0 : i32
    %c0_i32_0 = arith.constant 0 : i32
    return %arg0, %c0_i32 : i32, i32
  }
  func.func @transform_4(%arg0: i32, %arg1: i32) -> (i32, i32, i32) {
    %c0_i32 = arith.constant 0 : i32
    %c0_i32_0 = arith.constant 0 : i32
    return %arg1, %arg0, %c0_i32 : i32, i32, i32
  }
}

</mosaic_0001>

<bundles_post_ra>
// kernel: tpu_custom_call.1
= control target key start
LH: loop header
LB: loop body
LE: loop exit
PB: predicated region body
PF: predicated region fallthrough
CT: control target
= control target key end

     0   :  { %9 = vsyncpa [#allocation3], 0  ;;  %s1034_s0 = inlined_call_operand.hbm [shape: bf16[2,16,33], index: 0, kind: input, shape index: {}]   ;;  %s1035_s1 = inlined_call_operand.hbm [shape: bf16[33,128], index: 1, kind: input, shape index: {}]   ;;  %s1036_s2 = inlined_call_operand.vmem [shape: f32[1,128], index: 2, kind: input, shape index: {}]   ;;  %s1037_s3 = inlined_call_operand.vmem [shape: bf16[16,16], index: 3, kind: input, shape index: {}]   ;;  %s1038_s4 = inlined_call_operand.hbm [shape: f32[2,16,128], index: 4, kind: output, shape index: {}]  }
   0x1   :  { %10 = vsyncpa [#allocation6], 0 }
   0x2   :  { %11 = vsyncpa [#allocation4], 0 }
   0x3   :  { %13 = vsyncpa [#allocation4 + $0x1], 0  ;;  %s827_s15 = smov 0   ;;  %s829_s16 = smov 0  }
   0x4   :  { %s831_s17 = smov 0   ;;  %s833_s18 = smov 0  }
   0x5   :  { %s835_s19 = smov 0   ;;  %s837_s20 = smov 0  }
   0x6   :  { %s839_s21 = smov 0   ;;  %s841_s22 = smov 0  }
   0x7 LB: > { %1047 = sst [smem:[#allocation11_spill]] %s784_s20  ;;  %s485_s23 = sadd.s32 4294967295, %s792_s22   ;;  %s792_s22 = sphi %s841_s22, %s19_s22   ;;  %s788_s21 = sphi %s839_s21, %s1063_s21   ;;  %s784_s20 = sphi %s837_s20, %s1062_s20   ;;  %s780_s19 = sphi %s835_s19, %s1061_s19   ;;  %s776_s18 = sphi %s833_s18, %s1060_s18   ;;  %s772_s17 = sphi %s831_s17, %s1066_s17   ;;  %s768_s16 = sphi %s829_s16, %s1065_s16   ;;  %s764_s15 = sphi %s827_s15, %s1064_s15  }
   0x8   : > { %1048 = sst [smem:[#allocation12_spill]] %s788_s21  ;;  %s486_s24 = sadd.s32 4294967294, %s792_s22  }
   0x9   : > { %s28_s25 = sadd.s32 1, %s784_s20  ;;  %s31_s26 = sadd.s32 1, %s788_s21 }
   0xa   : > { %p29_p0 = scmp.ge.s32.totalorder %s28_s25, 2  ;;  %s129_s27 = sadd.s32 1, %s772_s17 }
   0xb   : > { %p139_p1 = scmp.ne.s32.totalorder %s772_s17, %s768_s16  ;;  %p140_p2 = scmp.eq.s32.totalorder %s485_s23, 3 }
   0xc   : > { %s1068_s25 = smov (%p29_p0, %s28_s25), 0  ;;  %s1070_s26 = smov (!%p29_p0, %s31_s26), %s788_s21 }
   0xd   : > { %1049 = sst [smem:[#allocation13_spill]] %s1068_s25  ;;  %s124_s28 = ssub.s32 %s784_s20, %s1068_s25 }
   0xe   : > { %p879_p3 = por %p140_p2, %p139_p1  ;;  %p33_p4 = scmp.ge.s32.totalorder %s1070_s26, 2 }
   0xf   : > { %p145_p5 = scmp.ne.s32.totalorder %s768_s16, %s764_s15  ;;  %p146_p6 = scmp.eq.s32.totalorder %s486_s24, 3 }
  0x10   : > { %s1050_s29 = scalar_select %p879_p3, 1, 0 }
  0x11   : > { %p487_p7 = scmp.ge.s32.totalorder %s792_s22, 1  ;;  %s1072_s26 = smov (%p33_p4, %s1070_s26), 0 }
  0x12   : > { %1051 = sst [smem:[#allocation14_spill]] %s1072_s26  ;;  %p888_p8 = por %p146_p6, %p145_p5 }
  0x13   : > { %p153_p9 = scmp.lt.s32.totalorder %s792_s22, 5  ;;  %s125_s5 = ssub.s32 %s788_s21, %s1072_s26 }
  0x14   : > { %s1052_s30 = scalar_select %p888_p8, 1, 0 }
  0x15   : > { %s126_s6 = sor.u32 %s125_s5, %s124_s28  ;;  %p895_p10 = pnand %p487_p7, %p153_p9 }
  0x16   : > { %p127_p11 = scmp.eq.s32.totalorder %s126_s6, 0  ;;  %p899_p12 = scmp.eq.s32.totalorder %s485_s23, 0 }
  0x17   : > { %s1053_s7 = scalar_select %p895_p10, 1, 0 }
  0x18   : > { %s1054_s8 = scalar_select %p899_p12, 1, 0 }
  0x19   : > { %p543_p13 = pneg %p895_p10  ;;  %s794_s10 = smov [#allocation2]  }
  0x1a   : > { %s906_s9 = scalar_select %p127_p11, %s772_s17, %s129_s27  }
  0x1b   : > { %s165_s11 = sshll.u32 %s794_s10, 4  ;;  %p910_p0 = pnand %p899_p12, %p543_p13  ;;  %s166_s11 = int_to_ptr.vmem [resolvable:$true] %s165_s11 }
  0x1c   : > { %s634_s23 = scalar_lea.hbm %s1034_s0, 256 }
  0x1d   : > { %p635_p1 = scmp.ne.s32.totalorder %s1034_s0, %s634_s23  ;;  %p636_p2 = pneg %p910_p0 }
  0x1e   : > { %p641_p6 = scmp.lt.u32.totalorder %s634_s23, %s1034_s0 }
  0x1f   : > { %p637_p4 = pnand %p636_p2, %p635_p1 }
  0x21   : > { %p638_p5 = pneg %p637_p4 }
  0x23   : > { %p643_p7 = pnand %p641_p6, %p638_p5 }
  0x25   : > { %646 = shalt.err (!%p643_p7)
}
  0x26   : > { %s647_s6 = scalar_lea.vmem %s166_s11, 256  ;;  %p655_p8 = scmp.lt.s32.totalorder %s166_s11, %s166_s11 }
  0x27   : > { %p648_p9 = scmp.ne.s32.totalorder %s166_s11, %s647_s6  ;;  %p656_p3 = scmp.lt.s32.totalorder %s647_s6, %s647_s6 }
  0x29   : > { %p650_p11 = pnand %p648_p9, %p636_p2  ;;  %p657_p12 = por %p656_p3, %p655_p8 }
  0x2b   : > { %p651_p13 = pneg %p650_p11 }
  0x2d   : > { %p658_p10 = pnand %p657_p12, %p651_p13 }
  0x2f   : > { %661 = shalt.err (!%p658_p10)
}
  0x30   : > { %s795_s10 = smov 64   ;;  %s796_s13 = smov 4  }
  0x31   : > { %546 = dma.hbm_to_vmem [thread:$0]  (!%p910_p0), %s1034_s0, 256, %s166_s11, [#allocation3], %s795_s10, %s795_s10, %s796_s13  }
  0x32   : > { %s797_s24 = smov [#allocation5]   ;;  %s662_s26 = scalar_lea.hbm %s1035_s1, 320 }
  0x33   : > { %s178_s28 = sshll.u32 %s797_s24, 4  ;;  %p663_p3 = scmp.ne.s32.totalorder %s1035_s1, %s662_s26  ;;  %s179_s28 = int_to_ptr.vmem [resolvable:$true] %s178_s28 }
  0x34   : > { %p669_p12 = scmp.lt.u32.totalorder %s662_s26, %s1035_s1 }
  0x35   : > { %p665_p8 = pnand %p663_p3, %p636_p2 }
  0x37   : > { %p666_p10 = pneg %p665_p8 }
  0x39   : > { %p671_p1 = pnand %p669_p12, %p666_p10 }
  0x3b   : > { %674 = shalt.err (!%p671_p1)
}
  0x3c   : > { %s675_s11 = scalar_lea.vmem %s179_s28, 320  ;;  %p683_p7 = scmp.lt.s32.totalorder %s179_s28, %s179_s28 }
  0x3d   : > { %p676_p4 = scmp.ne.s32.totalorder %s179_s28, %s675_s11  ;;  %p684_p9 = scmp.lt.s32.totalorder %s675_s11, %s675_s11 }
  0x3f   : > { %p678_p5 = pnand %p676_p4, %p636_p2  ;;  %p685_p11 = por %p684_p9, %p683_p7 }
  0x41   : > { %p679_p6 = pneg %p678_p5 }
  0x43   : > { %p686_p13 = pnand %p685_p11, %p679_p6 }
  0x45   : > { %689 = shalt.err (!%p686_p13)
}
  0x46   : > { %549 = dma.hbm_to_vmem [thread:$0]  (!%p910_p0), %s1035_s1, 320, %s179_s28, [#allocation6], %s795_s10, %s795_s10, %s796_s13  }
  0x47   : > { %p1056_p3 = scmp.ne.s32.totalorder %s1053_s7, 0 }
  0x48   : > { %p1057_p8 = scmp.ne.s32.totalorder (!%p1056_p3), %s1054_s8, 0 }
  0x49   : > { %204 = sbr.rel (%p1056_p3) target bundleno = 544 (0x220), region = 36 }
  0x50   : > { %751 = dma.done.wait (%p1057_p8), [#allocation3], 256  }
  0x51   : > { %753 = vsyncadd (%p1057_p8), [#allocation3], 4294967040 }
  0x52   : > { %755 = dma.done.wait (%p1057_p8), [#allocation6], 320  }
  0x53   : > { %757 = vsyncadd (%p1057_p8), [#allocation6], 4294966976  ;;  %v798_v0 = vmov 0.0   ;;  %vm799_vm0 = vmmov 0   ;;  %s510_s20 = sshll.u32 %s776_s18, 3  ;;  %vm272_vm1 = vcmask 1040384  }
  0x54   : > { %517 = vmatprep.subr.bf16.mxu0 %v798_v0  ;;  %523 = vmatprep.mubr.msk.bf16.mxu0 %vm799_vm0, %v798_v0  ;;  %v630_v1 = vld [vmem:[#allocation5] sm:$0xff]   ;;  %v631_v2 = vld [vmem:[#allocation5 + $0x8] sm:$0xff]   ;;  %v632_v3 = vld [vmem:[#allocation5 + $0x10] ss:$0 sps:$4 sm:$0x11]   ;;  %v800_v4 = vmov 0  }
  0x55   : > { %527 = vmatprep.subr.bf16.mxu1 %v798_v0  ;;  %529 = vmatprep.mubr.msk.bf16.mxu1 %vm799_vm0, %v798_v0  ;;  %v274_v5 = vsel %vm272_vm1, 65535, %v800_v4  ;;  %s240_s21 = scalar_lea.vmem [#allocation2], %s510_s20  ;;  %vm268_vm2 = vcmask 269312   ;;  %p233_p0 = scmp.lt.s32.totalorder %s780_s19, 1  ;;  %vm328_vm3 = vcmask 130048  }
  0x56   : > { %518 = vmatpush3.bf16.msra.mxu0 %v630_v1  ;;  %v276_v6 = vand.u32 %v632_v3, %v274_v5  ;;  %v633_v7 = vld [vmem:[%s240_s21] sm:$0xff]   ;;  %s230_s13 = sand.u32 1, %s768_s16   ;;  %s506_s24 = sshll.u32 %s776_s18, 1 }
  0x57   : > { %519 = vmatprep.subr.bf16.mxu0 %v798_v0  ;;  %s234_s26 = scalar_select %p233_p0, %s780_s19, 1  ;;  %v503_v14 = vld [vmem:[%s1036_s2] ss:$0 sm:$0xff] }
  0x58   : > { %s494_s23 = sshll.u32 %s230_s13, 3  ;;  %s385_s28 = sadd.s32 %s780_s19, %s506_s24 }
  0x59   : > { %s495_s7 = sshll.u32 %s234_s26, 2  ;;  %s507_s6 = sshll.u32 %s385_s28, 7 }
  0x5a   : > { %520 = vmatpush3.bf16.msra.mxu0 %v631_v2  ;;  %s236_s10 = scalar_lea.vmem %s1037_s3, %s495_s7  ;;  %s232_s11 = scalar_lea.vmem [#allocation7], %s494_s23 }
  0x5b   : > { %521 = vmatprep.subr.bf16.mxu0 %v798_v0  ;;  %v319_v13 = vld [vmem:[%s236_s10] sm:$0xf]  ;;  %s389_s25 = sshll.u32 %s232_s11, 4  ;;  %s981_s21 = scalar_lea.hbm %s1038_s4, %s507_s6  ;;  %s983_s25 = int_to_ptr.vmem [resolvable:$true] %s389_s25 }
  0x5c   : > { %s374_s18 = scalar_lea.sflag [#allocation4], %s230_s13  ;;  %s690_s19 = scalar_lea.vmem %s983_s25, 128 }
  0x5d   : > { %p691_p2 = scmp.ne.s32.totalorder %s983_s25, %s690_s19  ;;  %p1058_p10 = scmp.ne.s32.totalorder %s1050_s29, 0 }
  0x5e   : > { %522 = vmatpush3.bf16.msra.mxu0 %v276_v6  ;;  %s801_s26 = smov [#allocation7]  }
  0x5f   : > { %p692_p12 = pnand %p691_p2, %p1058_p10  ;;  %s694_s7 = sshll.u32 %s801_s26, 4  ;;  %s695_s7 = int_to_ptr.vmem [resolvable:$false] %s694_s7 }
  0x60   : > { %s696_s8 = scalar_lea.vmem %s695_s7, 256  ;;  %p697_p4 = scmp.lt.s32.totalorder %s983_s25, %s695_s7 }
  0x61   : > { %524 = vmatmul.mubr.msk.bf16.vlgmr.msra.gmra.mrb[0].mxu0 %vm268_vm2, %v633_v7  ;;  %p693_p1 = pneg %p692_p12  ;;  %p698_p5 = scmp.lt.s32.totalorder %s696_s8, %s690_s19 }
  0x63   : > { %p699_p6 = por %p698_p5, %p697_p4 }
  0x65   : > { %p700_p7 = pnand %p699_p6, %p693_p1 }
 0x134   : > { %v312_v8 = vpop.f32.mrb[0].mxu0 }
 0x135   : > { %v525_v9 = vpop.f32.mrb[1].mxu0 }
 0x136   : > { %v315_v10 = vpop.f32.mrb[2].mxu0 }
 0x137   : > { %v320_v11 = vpack.c.bf16 %v315_v10, %v312_v8  ;;  %v526_v12 = vpop.f32.mrb[3].mxu0 }
 0x139   : > { %528 = vmatpush3.bf16.msra.mxu1 %v320_v11 }
 0x13c   : > { %530 = vmatmul.mubr.msk.bf16.vlgmr.msra.gmra.mrb[0].mxu1 %vm328_vm3, %v319_v13 }
 0x20f   : > { %v366_v15 = vpop.f32.mrb[0].mxu1 }
 0x210   : > { %v367_v16 = vadd.f32 %v503_v14, %v366_v15  ;;  %v531_v17 = vpop.f32.mrb[1].mxu1 }
 0x211   : > { %v369_v18 = vpop.f32.mrb[2].mxu1 }
 0x212   : > { %372 = vst [vmem:[%s232_s11] sm:$0xff] %v367_v16  ;;  %v532_v19 = vpop.f32.mrb[3].mxu1 }
 0x213   : > { %703 = shalt.err (!%p700_p7)
}
 0x214   : > { %s704_s12 = scalar_lea.hbm %s981_s21, 128  ;;  %s708_s23 = scalar_lea.hbm %s1038_s4, 512 }
 0x215   : > { %p705_p9 = scmp.ne.s32.totalorder %s981_s21, %s704_s12  ;;  %p709_p3 = scmp.lt.u32.totalorder %s981_s21, %s1038_s4 }
 0x216   : > { %p710_p8 = scmp.lt.u32.totalorder %s708_s23, %s704_s12  ;;  %p712_p2 = scmp.lt.u32.totalorder %s704_s12, %s981_s21 }
 0x217   : > { %p706_p11 = pnand %p705_p9, %p1058_p10 }
 0x218   : > { %p711_p0 = por %p710_p8, %p709_p3 }
 0x219   : > { %p707_p13 = pneg %p706_p11 }
 0x21a   : > { %p713_p12 = por %p712_p2, %p711_p0 }
 0x21c   : > { %p714_p1 = pnand %p713_p12, %p707_p13 }
 0x21e   : > { %717 = shalt.err (!%p714_p1)
}
 0x21f   : > { %541 = dma.vmem_to_hbm [thread:$0]  (%p1058_p10), %s983_s25, 128, %s981_s21, %s374_s18  }
 0x220 PF: > { %p558_p4 = scmp.ge.s32.totalorder %s792_s22, 2  ;;  %s401_s27 = sand.u32 1, %s764_s15  }
 0x221   : > { %p1059_p5 = scmp.ne.s32.totalorder %s1052_s30, 0  ;;  %s402_s5 = scalar_lea.sflag [#allocation4], %s401_s27 }
 0x223   : > { %p551_p6 = pnand %p558_p4, %p1059_p5 }
 0x225   : > { %759 = dma.done.wait (!%p551_p6), %s402_s5, 128  }
 0x226   : > { %761 = vsyncadd (!%p551_p6), %s402_s5, 4294967168  ;;  %s19_s22 = sadd.s32 1, %s792_s22   ;;  %s1060_s18 = sld [smem:[#allocation11_spill]] }
 0x227   : > { %p16_p7 = scmp.ge.s32.totalorder %s19_s22, 6   ;;  %s1061_s19 = sld [smem:[#allocation12_spill]] }
 0x228   : > { %s1062_s20 = sld [smem:[#allocation13_spill]]  ;;  %s1063_s21 = sld [smem:[#allocation14_spill]] }
 0x229   : > { %s1064_s15 = smov %s768_s16  ;;  %s1065_s16 = smov %s772_s17 }
 0x22a   : > { %s1066_s17 = smov %s906_s9  ;;  %18 = sbr.rel (!%p16_p7) target bundleno = 7 (0x7), region = 81 }
 0x231   :  { %407 = vsyncpa [#allocation3], 1 }
 0x232   :  { %409 = vsyncpa [#allocation3 + $0x1], 1 }
 0x233   :  { %410 = vsyncpa [#allocation6], 1 }
 0x234   :  { %411 = vsyncpa [#allocation4], 1 }
 0x235   :  { %413 = vsyncpa [#allocation4 + $0x1], 1 }

</bundles_post_ra>
